<compile_context>
chip_gen: v7x
topology: tpu7x:2x2x1
jax: 0.10.0
libtpu: 0.0.40
codegen_flags: <defaults>
</compile_context>

<pallas_src>
import functools
import math

import jax
import jax.numpy as jnp
import numpy as np
from jax import lax
from jax.experimental import pallas as pl
from jax.experimental.pallas import tpu as pltpu


# ---------------------------------------------------------------------------
# Kernel
# ---------------------------------------------------------------------------
def _patch_nce_kernel(q_ref, k_ref, loss_ref, *, inv_t, assume_normalized):
    """One grid step = `bt` images x `tq` query rows.

    q_ref    : (bt, tq, D)  query rows of this tile
    k_ref    : (bt, P,  D)  all key rows of these images (resident across rows)
    loss_ref : (bt, tq)     lane-dense loss tile
    """
    q = q_ref[...]                      # (bt, tq, D)
    k = k_ref[...]                      # (bt, P,  D)
    tq = q.shape[1]
    P = k.shape[1]

    # Matching key rows for the positive pair (slice of the resident K tile).
    if tq == P:
        k_rows = k
    else:
        off = pl.multiple_of(pl.program_id(1) * tq, tq)   # tq is a multiple of 8
        k_rows = k_ref[:, pl.ds(off, tq), :]

    # Positive logits: exact f32 per-row dot over D (VPU multiply + reduce).
    l_pos = jnp.sum(q.astype(jnp.float32) * k_rows.astype(jnp.float32),
                    axis=-1, keepdims=True)               # (bt, tq, 1)

    # All-pairs similarities on the MXU, f32 accumulation.  The UNMASKED
    # diagonal of q @ k^T is exactly the positive logit, so the softmax
    # denominator is taken over the unmasked row -- no iota / compare / select.
    l_neg = jnp.einsum("bqd,bkd->bqk", q, k,
                       preferred_element_type=jnp.float32)  # (bt, tq, P)

    logit_pos = l_pos * inv_t           # inv_t is a Python float (no captures)
    logit_neg = l_neg * inv_t

    # PyTorch replaces the diagonal with -10 before the softmax; that term is
    # re-added as a per-row scalar instead of a (tq, P) masked fill.
    if assume_normalized:
        # |logits| <= 1/T for L2-normalized features: exp cannot overflow, so
        # the row-max subtraction (an extra XLU pass over (tq, P)) is skipped.
        denom = jnp.sum(jnp.exp(logit_neg), axis=-1, keepdims=True)
        denom = denom + math.exp(-10.0 * inv_t)
        loss = -logit_pos + jnp.log(denom)
    else:
        m = jnp.max(logit_neg, axis=-1, keepdims=True)      # (bt, tq, 1)
        m = jnp.maximum(m, -10.0 * inv_t)                   # keeps the -10 term safe
        denom = jnp.sum(jnp.exp(logit_neg - m), axis=-1, keepdims=True)
        denom = denom + jnp.exp((-10.0 * inv_t) - m)        # per-row scalar term
        loss = -logit_pos + m + jnp.log(denom)

    loss_ref[...] = loss[..., 0]        # (bt, tq): lane-dense store


# ---------------------------------------------------------------------------
# Tiling / VMEM sizing
# ---------------------------------------------------------------------------
def _vmem_config():
    """Generation-aware VMEM sizing (v5e/v6e: 128 MiB, v7x: 64 MiB per TC)."""
    cap = 64 * 1024 * 1024                          # conservative fallback
    try:
        cap = int(pltpu.get_tpu_info().vmem_capacity_bytes)
    except Exception:
        pass
    budget = cap // 2                               # block-sizing budget
    limit = max(min((3 * cap) // 4, cap - (16 << 20)), budget)
    multi_tc = cap <= (64 << 20)                    # heuristic: 64-MiB parts (v7x) have 2 TCs
    return budget, limit, multi_tc


def _divisors_desc(n):
    return [d for d in range(n, 0, -1) if n % d == 0]


def _footprint_bytes(bt, tq, P, D, in_itemsize):
    """Per-grid-step VMEM estimate: counts what the kernel actually materializes."""
    q_io = 2 * bt * tq * D * in_itemsize            # q tile, double-buffered
    k_io = 2 * bt * P * D * in_itemsize             # resident full-K tile, double-buffered
    pos_ws = 2 * bt * tq * D * 4                    # f32 upcasts feeding the per-row dot
    neg_ws = 4 * bt * tq * P * 4                    # f32 logits working copies (mm out / scale / shift / exp)
    out_io = 2 * bt * tq * 4                        # loss tile, double-buffered
    return q_io + k_io + pos_ws + neg_ws + out_io


def _choose_tiles(B, P, D, in_itemsize, budget, multi_tc):
    """Returns (bt, tq).  Invariant: bt > 1 only when tq == P."""
    bt, tq = 1, P
    for d in _divisors_desc(B):                     # largest image block that fits
        if _footprint_bytes(d, P, P, D, in_itemsize) <= budget:
            bt = d
            break
    if _footprint_bytes(bt, P, P, D, in_itemsize) > budget:
        bt = 1                                      # even one image too big: tile query rows
        for d in _divisors_desc(P):
            if d < P and d % 8 == 0 and _footprint_bytes(1, d, P, D, in_itemsize) <= budget:
                tq = d
                break
    if multi_tc and (B // bt) * (P // tq) == 1:     # give both v7x TensorCores work
        if B > 1:
            bt = max(d for d in _divisors_desc(B) if d < B)
        else:
            row_splits = [d for d in _divisors_desc(P) if d < P and d % 8 == 0]
            if row_splits:
                tq = row_splits[0]
    return bt, tq


# ---------------------------------------------------------------------------
# Wrapper
# ---------------------------------------------------------------------------
def patch_nce_loss2(feat_q, feat_k, *, batch_size, nce_t,
                    nce_includes_all_negatives_from_minibatch=False,
                    low_precision=False, assume_normalized=False,
                    row_block=None):
    """JAX/Pallas equivalent of PatchNCELoss2.forward (reduction='none').

    feat_q, feat_k: [N, D], N = batch_size * npatches.  Returns loss of shape [N].
    low_precision : cast q/k to bf16 in the wrapper (halves DMA; f32 accumulation).
    assume_normalized : skip the row-max shift (safe for L2-normalized features).
    row_block     : optional override of the query-row tile (multiple of 8 dividing P).
    """
    feat_k = lax.stop_gradient(feat_k)              # .detach()
    N, D = feat_q.shape
    B = 1 if nce_includes_all_negatives_from_minibatch else batch_size
    if N % B:
        raise ValueError(f"N={N} is not divisible by the bmm batch dim {B}")
    P = N // B

    if low_precision:                               # wrapper-side cast: halves HBM->VMEM DMA
        feat_q = feat_q.astype(jnp.bfloat16)
        feat_k = feat_k.astype(jnp.bfloat16)

    q = feat_q.reshape(B, P, D)
    k = feat_k.reshape(B, P, D)

    budget, limit, multi_tc = _vmem_config()
    bt, tq = _choose_tiles(B, P, D, q.dtype.itemsize, budget, multi_tc)
    if row_block is not None:
        if P % row_block or not (row_block % 8 == 0 or row_block == P):
            raise ValueError(f"row_block={row_block} must divide P={P} and be a multiple of 8")
        tq = row_block
        if tq < P:
            bt = 1
    G, R = B // bt, P // tq

    kernel = functools.partial(
        _patch_nce_kernel,
        inv_t=float(1.0 / nce_t),
        assume_normalized=bool(assume_normalized))

    loss = pl.pallas_call(
        kernel,
        # (G, R, bt, tq): last two dims are full block dims -> always legal,
        # and the lane dim (tq) is the full row tile -> lane-dense stores.
        out_shape=jax.ShapeDtypeStruct((G, R, bt, tq), jnp.float32),
        grid_spec=pltpu.PrefetchScalarGridSpec(
            num_scalar_prefetch=0,
            grid=(G, R),                            # R inner: full-K tile stays resident
            in_specs=[
                pl.BlockSpec((bt, tq, D), lambda b, r: (b, r, 0)),
                pl.BlockSpec((bt, P, D), lambda b, r: (b, 0, 0)),
            ],
            out_specs=pl.BlockSpec((None, None, bt, tq), lambda b, r: (b, r, 0, 0)),
        ),
        compiler_params=pltpu.CompilerParams(
            dimension_semantics=("parallel", "parallel"),
            vmem_limit_bytes=int(limit),
        ),
    )(q, k)

    # (G, R, bt, tq) -> (G, bt, R, tq) -> [N] matches PyTorch's view(-1, npatches) order.
    return jnp.transpose(loss, (0, 2, 1, 3)).reshape(N)


# ---------------------------------------------------------------------------
# Pure-JAX reference (mirrors the PyTorch fp32 math)
# ---------------------------------------------------------------------------
def _reference(feat_q, feat_k, *, bmm_batch, nce_t):
    N, D = feat_q.shape
    B = bmm_batch
    P = N // B
    l_pos = jnp.sum(feat_q * feat_k, axis=1, keepdims=True)            # (N, 1)
    q = feat_q.reshape(B, P, D)
    k = feat_k.reshape(B, P, D)
    l_neg = jnp.einsum('bpd,bqd->bpq', q, k, precision=lax.Precision.HIGHEST)
    eye = jnp.eye(P, dtype=bool)[None]
    l_neg = jnp.where(eye, -10.0, l_neg).reshape(N, P)
    out = jnp.concatenate([l_pos, l_neg], axis=1) / nce_t
    return -out[:, 0] + jax.scipy.special.logsumexp(out, axis=1)


if __name__ == "__main__":
    batch_size = 2
    npatches = 8
    dim = 32
    nce_T = 0.07
    N = batch_size * npatches

    key = jax.random.PRNGKey(0)
    kq, kk = jax.random.split(key)
    feat_q = jax.random.normal(kq, (N, dim), dtype=jnp.float32)
    feat_k = jax.random.normal(kk, (N, dim), dtype=jnp.float32)
    feat_q = feat_q / jnp.linalg.norm(feat_q, axis=1, keepdims=True)
    feat_k = feat_k / jnp.linalg.norm(feat_k, axis=1, keepdims=True)

    # 1) Default f32 path vs. the fp32 reference.  Tolerance covers the TPU
    #    MXU's default f32 contraction, amplified by 1/T ~= 14.3.
    loss = patch_nce_loss2(feat_q, feat_k, batch_size=batch_size, nce_t=nce_T)
    loss = jax.block_until_ready(loss)
    ref = _reference(feat_q, feat_k, bmm_batch=batch_size, nce_t=nce_T)
    np.testing.assert_allclose(np.asarray(loss), np.asarray(ref),
                               rtol=1e-2, atol=2e-1)

    # 2) All-negatives-from-minibatch (bmm batch = 1) with a forced query-row
    #    tile: exercises the 2-D grid and the resident-K dynamic row slice.
    loss_b1 = patch_nce_loss2(feat_q, feat_k, batch_size=batch_size, nce_t=nce_T,
                              nce_includes_all_negatives_from_minibatch=True,
                              row_block=8)
    loss_b1 = jax.block_until_ready(loss_b1)
    ref_b1 = _reference(feat_q, feat_k, bmm_batch=1, nce_t=nce_T)
    np.testing.assert_allclose(np.asarray(loss_b1), np.asarray(ref_b1),
                               rtol=1e-2, atol=2e-1)

    # 3) bf16 fast path + normalized-feature shortcut, checked against a
    #    reference that applies the same bf16 input quantization in f32 math.
    loss_lp = patch_nce_loss2(feat_q, feat_k, batch_size=batch_size, nce_t=nce_T,
                              low_precision=True, assume_normalized=True)
    loss_lp = jax.block_until_ready(loss_lp)
    q_bf = feat_q.astype(jnp.bfloat16).astype(jnp.float32)
    k_bf = feat_k.astype(jnp.bfloat16).astype(jnp.float32)
    ref_lp = _reference(q_bf, k_bf, bmm_batch=batch_size, nce_t=nce_T)
    np.testing.assert_allclose(np.asarray(loss_lp), np.asarray(ref_lp),
                               rtol=1e-2, atol=5e-2)

    print("KERNEL_OK")
</pallas_src>

<mosaic_0001>
module attributes {stable_mosaic.version = 11 : i64} {
  func.func @_patch_nce_kernel(%arg0: i32, %arg1: i32, %arg2: memref<1x8x32xf32, #tpu.memory_space<vmem>>, %arg3: memref<1x8x32xf32, #tpu.memory_space<vmem>>, %arg4: memref<1x1x1x8xf32, #tpu.memory_space<vmem>>) attributes {dimension_semantics = [#tpu.dimension_semantics<parallel>, #tpu.dimension_semantics<parallel>], iteration_bounds = array<i64: 2, 1>, scalar_prefetch = 0 : i64, scratch_operands = 0 : i64, tpu.core_type = #tpu.core_type<tc>, window_params = [{transform_indices = @transform_0, window_bounds = array<i64: 1, 8, 32>}, {transform_indices = @transform_1, window_bounds = array<i64: 1, 8, 32>}, {transform_indices = @transform_2, window_bounds = array<i64: 1, 1, 1, 8>}]} {
    %c0 = arith.constant 0 : index
    %c0_0 = arith.constant 0 : index
    %c0_1 = arith.constant 0 : index
    %0 = vector.load %arg2[%c0, %c0_0, %c0_1] : memref<1x8x32xf32, #tpu.memory_space<vmem>>, vector<1x8x32xf32>
    %c0_2 = arith.constant 0 : index
    %c0_3 = arith.constant 0 : index
    %c0_4 = arith.constant 0 : index
    %1 = vector.load %arg3[%c0_2, %c0_3, %c0_4] : memref<1x8x32xf32, #tpu.memory_space<vmem>>, vector<1x8x32xf32>
    %2 = arith.mulf %0, %1 : vector<1x8x32xf32>
    %cst = arith.constant dense<0.000000e+00> : vector<1x8xf32>
    %3 = vector.multi_reduction <add>, %2, %cst [2] : vector<1x8x32xf32> to vector<1x8xf32>
    %4 = vector.shape_cast %3 : vector<1x8xf32> to vector<1x8x1xf32>
    "tpu.trace_start"() <{level = 10 : i32, message = "bqd,bkd->bqk"}> : () -> ()
    %cst_5 = arith.constant dense<0.000000e+00> : vector<1x8x8xf32>
    %5 = tpu.matmul %0, %1, %cst_5 {dimension_numbers = #tpu.dot_dimension_numbers<[2], [2], [1], [1], [0, 0, 0, 1, 1, 1], [0], [0]>} : vector<1x8x32xf32>, vector<1x8x32xf32>, vector<1x8x8xf32> -> vector<1x8x8xf32>
    "tpu.trace_stop"() : () -> ()
    %cst_6 = arith.constant 14.2857141 : f32
    %6 = vector.broadcast %cst_6 : f32 to vector<1x8x1xf32>
    %7 = arith.mulf %4, %6 : vector<1x8x1xf32>
    %cst_7 = arith.constant 14.2857141 : f32
    %8 = vector.broadcast %cst_7 : f32 to vector<1x8x8xf32>
    %9 = arith.mulf %5, %8 : vector<1x8x8xf32>
    %cst_8 = arith.constant dense<0xFF800000> : vector<1x8xf32>
    %10 = vector.multi_reduction <maximumf>, %9, %cst_8 [2] : vector<1x8x8xf32> to vector<1x8xf32>
    %11 = vector.shape_cast %10 : vector<1x8xf32> to vector<1x8x1xf32>
    %cst_9 = arith.constant -142.857147 : f32
    %12 = vector.broadcast %cst_9 : f32 to vector<1x8x1xf32>
    %13 = arith.maximumf %11, %12 : vector<1x8x1xf32>
    %14 = vector.broadcast %13 : vector<1x8x1xf32> to vector<1x8x8xf32>
    %15 = arith.subf %9, %14 : vector<1x8x8xf32>
    %16 = math.exp %15 : vector<1x8x8xf32>
    %cst_10 = arith.constant dense<0.000000e+00> : vector<1x8xf32>
    %17 = vector.multi_reduction <add>, %16, %cst_10 [2] : vector<1x8x8xf32> to vector<1x8xf32>
    %18 = vector.shape_cast %17 : vector<1x8xf32> to vector<1x8x1xf32>
    %cst_11 = arith.constant -142.857147 : f32
    %19 = vector.broadcast %cst_11 : f32 to vector<1x8x1xf32>
    %20 = arith.subf %19, %13 : vector<1x8x1xf32>
    %21 = math.exp %20 : vector<1x8x1xf32>
    %22 = arith.addf %18, %21 : vector<1x8x1xf32>
    %cst_12 = arith.constant 0.000000e+00 : f32
    %23 = vector.broadcast %cst_12 : f32 to vector<1x8x1xf32>
    %24 = arith.subf %23, %7 : vector<1x8x1xf32>
    %25 = arith.addf %24, %13 : vector<1x8x1xf32>
    %26 = math.log %22 : vector<1x8x1xf32>
    %27 = arith.addf %25, %26 : vector<1x8x1xf32>
    %28 = vector.shape_cast %27 : vector<1x8x1xf32> to vector<1x8xf32>
    %c0_13 = arith.constant 0 : index
    %c0_14 = arith.constant 0 : index
    %c0_15 = arith.constant 0 : index
    %c0_16 = arith.constant 0 : index
    %29 = vector.load %arg4[%c0_13, %c0_14, %c0_15, %c0_16] : memref<1x1x1x8xf32, #tpu.memory_space<vmem>>, vector<1x1x1x8xf32>
    %30 = vector.shape_cast %29 : vector<1x1x1x8xf32> to vector<1x8xf32>
    %31 = vector.shape_cast %28 : vector<1x8xf32> to vector<1x1x1x8xf32>
    tpu.vector_store %arg4[%c0_13, %c0_14, %c0_15, %c0_16], %31 {strides = array<i32>} : memref<1x1x1x8xf32, #tpu.memory_space<vmem>>, vector<1x1x1x8xf32>,
    return
  }
  func.func @transform_0(%arg0: i32, %arg1: i32) -> (i32, i32, i32) {
    %c0_i32 = arith.constant 0 : i32
    %c0_i32_0 = arith.constant 0 : i32
    return %arg0, %arg1, %c0_i32 : i32, i32, i32
  }
  func.func @transform_1(%arg0: i32, %arg1: i32) -> (i32, i32, i32) {
    %c0_i32 = arith.constant 0 : i32
    %c0_i32_0 = arith.constant 0 : i32
    %c0_i32_1 = arith.constant 0 : i32
    return %arg0, %c0_i32, %c0_i32_0 : i32, i32, i32
  }
  func.func @transform_2(%arg0: i32, %arg1: i32) -> (i32, i32, i32, i32) {
    %c0_i32 = arith.constant 0 : i32
    %c0_i32_0 = arith.constant 0 : i32
    %c0_i32_1 = arith.constant 0 : i32
    return %arg0, %arg1, %c0_i32, %c0_i32_0 : i32, i32, i32, i32
  }
}

</mosaic_0001>

<bundles_post_ra>
// kernel: tpu_custom_call.1
= control target key start
LH: loop header
LB: loop body
LE: loop exit
PB: predicated region body
PF: predicated region fallthrough
CT: control target
= control target key end

     0   :  { %7 = vsyncpa [#allocation3], 0  ;;  %s927_s0 = inlined_call_operand.hbm [shape: f32[2,8,32], index: 0, kind: input, shape index: {}]   ;;  %s928_s1 = inlined_call_operand.hbm [shape: f32[2,8,32], index: 1, kind: input, shape index: {}]   ;;  %s929_s2 = inlined_call_operand.hbm [shape: f32[2,1,1,8], index: 2, kind: output, shape index: {}]  }
   0x1   :  { %9 = vsyncpa [#allocation3 + $0x1], 0 }
   0x2   :  { %10 = vsyncpa [#allocation6], 0 }
   0x3   :  { %12 = vsyncpa [#allocation6 + $0x1], 0 }
   0x4   :  { %13 = vsyncpa [#allocation4], 0 }
   0x5   :  { %15 = vsyncpa [#allocation4 + $0x1], 0  ;;  %s706_s9 = smov 0   ;;  %s708_s10 = smov 0  }
   0x6   :  { %s710_s11 = smov 0   ;;  %s712_s12 = smov 0  }
   0x7   :  { %s714_s13 = smov 0   ;;  %s716_s14 = smov 0  }
   0x8 LB: > { %s440_s15 = sadd.s32 4294967295, %s684_s14   ;;  %s441_s16 = sadd.s32 4294967294, %s684_s14   ;;  %s684_s14 = sphi %s716_s14, %s21_s14   ;;  %s680_s13 = sphi %s714_s13, %s949_s13   ;;  %s676_s12 = sphi %s712_s12, %s948_s12   ;;  %s672_s11 = sphi %s710_s11, %s947_s11   ;;  %s668_s10 = sphi %s708_s10, %s946_s10   ;;  %s664_s9 = sphi %s706_s9, %s945_s9  }
   0x9   : > { %s33_s17 = sadd.s32 1, %s680_s13  ;;  %s42_s18 = sadd.s32 1, %s672_s11 }
   0xa   : > { %p35_p0 = scmp.ge.s32.totalorder %s33_s17, 2  ;;  %p49_p1 = scmp.ne.s32.totalorder %s672_s11, %s668_s10 }
   0xb   : > { %p50_p2 = scmp.eq.s32.totalorder %s684_s14, 0  ;;  %p55_p3 = scmp.ne.s32.totalorder %s668_s10, %s664_s9 }
   0xc   : > { %s951_s17 = smov (%p35_p0, %s33_s17), 0  ;;  %p56_p5 = scmp.eq.s32.totalorder %s440_s15, 0 }
   0xd   : > { %p747_p4 = por %p50_p2, %p49_p1  ;;  %s37_s20 = ssub.s32 %s680_s13, %s951_s17 }
   0xe   : > { %p107_p6 = scmp.eq.s32.totalorder %s440_s15, 1  ;;  %p40_p7 = scmp.eq.s32.totalorder %s37_s20, 0 }
   0xf   : > { %p753_p8 = por %p56_p5, %p55_p3  ;;  %p113_p10 = scmp.eq.s32.totalorder %s441_s16, 1 }
  0x10   : > { %p757_p9 = por %p107_p6, %p49_p1  ;;  %p480_p13 = scmp.lt.s32.totalorder %s684_s14, 2 }
  0x11   : > { %s933_s21 = scalar_select %p753_p8, 1, 0 }
  0x12   : > { %s934_s22 = scalar_select %p757_p9, 1, 0 }
  0x13   : > { %s762_s23 = scalar_select %p40_p7, %s672_s11, %s42_s18  }
  0x14   : > { %p764_p11 = por %p113_p10, %p55_p3  ;;  %s771_s25 = sand.u32 1, %s672_s11  }
  0x15   : > { %s444_s26 = sshll.u32 %s771_s25, 3  ;;  %s445_s27 = sshll.u32 %s680_s13, 7 }
  0x16   : > { %s935_s24 = scalar_select %p764_p11, 1, 0 }
  0x17   : > { %s780_s30 = scalar_lea.hbm %s927_s0, %s445_s27  ;;  %s137_s3 = scalar_lea.vmem [#allocation2], %s444_s26 }
  0x18   : > { %s145_s4 = sshll.u32 %s137_s3, 4  ;;  %p788_p0 = pnand %p480_p13, %p747_p4  ;;  %s784_s4 = int_to_ptr.vmem [resolvable:$true] %s145_s4 }
  0x19   : > { %s134_s6 = scalar_lea.sflag [#allocation3], %s771_s25  ;;  %s538_s7 = scalar_lea.hbm %s780_s30, 128 }
  0x1a   : > { %p539_p3 = scmp.ne.s32.totalorder %s780_s30, %s538_s7  ;;  %p540_p5 = pneg %p788_p0 }
  0x1b   : > { %s543_s16 = scalar_lea.hbm %s927_s0, 256  ;;  %p544_p4 = scmp.lt.u32.totalorder %s780_s30, %s927_s0 }
  0x1c   : > { %p541_p6 = pnand %p540_p5, %p539_p3  ;;  %p545_p10 = scmp.lt.u32.totalorder %s543_s16, %s538_s7 }
  0x1d   : > { %p547_p12 = scmp.lt.u32.totalorder %s538_s7, %s780_s30 }
  0x1e   : > { %p542_p7 = pneg %p541_p6  ;;  %p546_p13 = por %p545_p10, %p544_p4 }
  0x20   : > { %p548_p1 = por %p547_p12, %p546_p13 }
  0x22   : > { %p549_p2 = pnand %p548_p1, %p542_p7 }
  0x24   : > { %552 = shalt.err (!%p549_p2)
}
  0x25   : > { %s553_s20 = scalar_lea.vmem %s784_s4, 128  ;;  %s686_s28 = smov [#allocation2]  }
  0x26   : > { %p554_p3 = scmp.ne.s32.totalorder %s784_s4, %s553_s20  ;;  %s558_s29 = sshll.u32 %s686_s28, 4  ;;  %s559_s29 = int_to_ptr.vmem [resolvable:$false] %s558_s29 }
  0x27   : > { %s560_s3 = scalar_lea.vmem %s559_s29, 256  ;;  %p561_p9 = scmp.lt.s32.totalorder %s784_s4, %s559_s29 }
  0x28   : > { %p556_p6 = pnand %p554_p3, %p540_p5  ;;  %p562_p4 = scmp.lt.s32.totalorder %s560_s3, %s553_s20 }
  0x2a   : > { %p557_p11 = pneg %p556_p6  ;;  %p563_p10 = por %p562_p4, %p561_p9 }
  0x2c   : > { %p564_p12 = pnand %p563_p10, %p557_p11 }
  0x2e   : > { %567 = shalt.err (!%p564_p12)
}
  0x2f   : > { %472 = dma.hbm_to_vmem [thread:$0]  (!%p788_p0), %s780_s30, 128, %s784_s4, %s134_s6  }
  0x30   : > { %p937_p1 = scmp.lt.s32.totalorder %s684_s14, 3  ;;  %p938_p2 = scmp.ge.s32.totalorder %s684_s14, 1 }
  0x31   : > { %s833_s16 = scalar_lea.hbm %s928_s1, %s445_s27  ;;  %s156_s18 = scalar_lea.vmem [#allocation5], %s444_s26 }
  0x32   : > { %p824_p7 = pnand %p938_p2, %p937_p1  ;;  %s163_s19 = sshll.u32 %s156_s18, 4  ;;  %s164_s19 = int_to_ptr.vmem [resolvable:$true] %s163_s19 }
  0x33   : > { %s153_s30 = scalar_lea.sflag [#allocation6], %s771_s25  ;;  %s568_s4 = scalar_lea.hbm %s833_s16, 128 }
  0x34   : > { %s939_s7 = scalar_select %p824_p7, 1, 0 }
  0x35   : > { %p569_p9 = scmp.ne.s32.totalorder %s833_s16, %s568_s4  ;;  %s573_s27 = scalar_lea.hbm %s928_s1, 256 }
  0x36   : > { %p574_p3 = scmp.lt.u32.totalorder %s833_s16, %s928_s1  ;;  %p575_p6 = scmp.lt.u32.totalorder %s573_s27, %s568_s4 }
  0x37   : > { %p571_p11 = pnand %p569_p9, %p540_p5  ;;  %p577_p10 = scmp.lt.u32.totalorder %s568_s4, %s833_s16 }
  0x38   : > { %p576_p4 = por %p575_p6, %p574_p3 }
  0x39   : > { %p572_p13 = pneg %p571_p11 }
  0x3a   : > { %p578_p12 = por %p577_p10, %p576_p4 }
  0x3c   : > { %p579_p1 = pnand %p578_p12, %p572_p13 }
  0x3e   : > { %582 = shalt.err (!%p579_p1)
}
  0x3f   : > { %s583_s25 = scalar_lea.vmem %s164_s19, 128  ;;  %s687_s26 = smov [#allocation5]  }
  0x40   : > { %p584_p2 = scmp.ne.s32.totalorder %s164_s19, %s583_s25  ;;  %s588_s3 = sshll.u32 %s687_s26, 4  ;;  %s589_s3 = int_to_ptr.vmem [resolvable:$false] %s588_s3 }
  0x41   : > { %s590_s8 = scalar_lea.vmem %s589_s3, 256  ;;  %p591_p8 = scmp.lt.s32.totalorder %s164_s19, %s589_s3 }
  0x42   : > { %p586_p9 = pnand %p584_p2, %p540_p5  ;;  %p592_p7 = scmp.lt.s32.totalorder %s590_s8, %s583_s25 }
  0x44   : > { %p587_p11 = pneg %p586_p9  ;;  %p593_p3 = por %p592_p7, %p591_p8 }
  0x46   : > { %p594_p6 = pnand %p593_p3, %p587_p11 }
  0x48   : > { %597 = shalt.err (!%p594_p6)
}
  0x49   : > { %475 = dma.hbm_to_vmem [thread:$0]  (!%p788_p0), %s833_s16, 128, %s164_s19, %s153_s30  }
  0x4a   : > { %p940_p13 = scmp.ne.s32.totalorder %s939_s7, 0 }
  0x4b   : > { %s860_s15 = sand.u32 (!%p940_p13), 1, %s668_s10   ;;  %p941_p5 = scmp.ne.s32.totalorder (!%p940_p13), %s933_s21, 0 }
  0x4c   : > { %172 = sbr.rel (%p940_p13) target bundleno = 641 (0x281), region = 28  ;;  %s449_s18 = sshll.u32 (!%p940_p13), %s860_s15, 3 }
  0x4d   : > { %s175_s4 = scalar_lea.sflag (!%p940_p13), [#allocation3], %s860_s15  ;;  %s178_s6 = scalar_lea.vmem (!%p940_p13), [#allocation2], %s449_s18 }
  0x53   : > { %651 = dma.done.wait (%p941_p5), %s175_s4, 128  }
  0x54   : > { %653 = vsyncadd (%p941_p5), %s175_s4, 4294967168  ;;  %s184_s5 = scalar_lea.sflag [#allocation6], %s860_s15  ;;  %s187_s16 = scalar_lea.vmem [#allocation5], %s449_s18 }
  0x55   : > { %655 = dma.done.wait (%p941_p5), %s184_s5, 128  }
  0x56   : > { %657 = vsyncadd (%p941_p5), %s184_s5, 4294967168  ;;  %v688_v0 = vmov 0.0   ;;  %vm689_vm0 = vmmov 0   ;;  %vm215_vm1 = vcmask 261120   ;;  %v213_v1 = vld [vmem:[%s187_s16] sm:$0xff]  ;;  %v212_v2 = vld [vmem:[%s178_s6] sm:$0xff]  ;;  %v318_v22 = vlaneseq }
  0x57   : > { %458 = vmatprep.subr.mxu0 %v688_v0  ;;  %460 = vmatprep.mubr.msk.f32.mxu0 %vm689_vm0, %v688_v0  ;;  %v214_v3 = vmul.f32 %v213_v1, %v212_v2  ;;  %vm297_vm2 = vcmask 64512   ;;  %s453_s21 = sshll.u32 %s676_s12, 4  ;;  %s211_s7 = scalar_lea.vmem [#allocation7], %s860_s15  ;;  %vm325_vm3 = vcmask 57344  }
  0x58   : > { %459 = vmatpush3.xpose.msk.msra.mxu0 %vm215_vm1, %v213_v1  ;;  %v319_v24 = vand.u32 127, %v318_v22  ;;  %v321_v25 = vshrl.u32 %v318_v22, 7  ;;  %s341_s19 = sshll.u32 %s211_s7, 4  ;;  %s878_s27 = scalar_lea.hbm %s929_s2, %s453_s21  ;;  %s880_s19 = int_to_ptr.vmem [resolvable:$true] %s341_s19 }
  0x59   : > { %v216_v4 = vsel %vm215_vm1, %v214_v3, 0.0  ;;  %s328_s28 = scalar_lea.sflag [#allocation4], %s860_s15  ;;  %s598_s29 = scalar_lea.vmem %s880_s19, 16 }
  0x5a   : > { %217 = vadd.xlane.f32.xlu1 %v216_v4  ;;  %v322_v28 = vsub.s32 %v319_v24, %v321_v25  ;;  %p599_p8 = scmp.ne.s32.totalorder %s880_s19, %s598_s29  ;;  %p942_p0 = scmp.ne.s32.totalorder %s934_s22, 0 }
  0x5b   : > { %461 = vmatmul.mubr.msk.f32.vlgmr.msra.gmra.mrb[0].mxu0 %vm215_vm1, %v212_v2  ;;  %s690_s12 = smov [#allocation7]  }
  0x5c   : > { %p600_p7 = pnand %p599_p8, %p942_p0  ;;  %s602_s25 = sshll.u32 %s690_s12, 4  ;;  %s603_s25 = int_to_ptr.vmem [resolvable:$false] %s602_s25 }
  0x5d   : > { %s604_s26 = scalar_lea.vmem %s603_s25, 32  ;;  %p605_p10 = scmp.lt.s32.totalorder %s880_s19, %s603_s25 }
  0x5e   : > { %p601_p4 = pneg %p600_p7  ;;  %p606_p12 = scmp.lt.s32.totalorder %s604_s26, %s598_s29 }
  0x60   : > { %p607_p1 = por %p606_p12, %p605_p10 }
  0x62   : > { %p608_p2 = pnand %p607_p1, %p601_p4 }
  0xe7   : > { %v218_v20 = vpop.xlane.xlu1 %217 }
  0xe8   : > { %v295_v21 = vmul.f32 14.285714, %v218_v20 }
  0xea   : > { %v312_v23 = vsub.f32 0.0, %v295_v21 }
 0x12e   : > { %v291_v5 = vpop.f32.mrb[0].mxu0 }
 0x12f   : > { %v296_v6 = vmul.f32 14.285714, %v291_v5  ;;  %v462_v7 = vpop.f32.mrb[1].mxu0 }
 0x131   : > { %v298_v8 = vsel %vm297_vm2, %v296_v6, -inf }
 0x132   : > { %299 = vmax.xlane.f32.xlu0 %v298_v8 }
 0x1bf   : > { %v300_v9 = vpop.xlane.xlu0 %299 }
 0x1c0   : > { %v301_v10 = vmax.f32 %v300_v9, -142.85715 }
 0x1c2   : > { %v302_v11 = vsub.f32 %v296_v6, %v301_v10  ;;  %v308_v15 = vsub.f32 -142.85715, %v301_v10  ;;  %v313_v27 = vadd.f32 %v312_v23, %v301_v10 }
 0x1c4   : > { %v303_v12 = vmul.f32 1.442695, %v302_v11  ;;  %v309_v16 = vmul.f32 1.442695, %v308_v15 }
 0x1c6   : > { %532 = vpow2.f32 %v303_v12 }
 0x1c7   : > { %534 = vpow2.f32 %v309_v16 }
 0x1d0   : > { %v533_v13 = vpop.eup %532 }
 0x1d1   : > { %v305_v14 = vsel %vm297_vm2, %v533_v13, 0.0  ;;  %v535_v17 = vpop.eup %534 }
 0x1d2   : > { %306 = vadd.xlane.f32.xlu0 %v305_v14 }
 0x25f   : > { %v307_v18 = vpop.xlane.xlu0 %306 }
 0x260   : > { %v311_v19 = vadd.f32 %v535_v17, %v307_v18 }
 0x262   : > { %536 = vlog2.f32 %v311_v19 }
 0x26c   : > { %v537_v26 = vpop.eup %536 }
 0x26d   : > { %v315_v29 = vmul.f32 0.6931472, %v537_v26 }
 0x26f   : > { %v316_v30 = vadd.f32 %v315_v29, %v313_v27 }
 0x271   : > { %v323_v31 = vrot.slane %v316_v30, %v322_v28 }
 0x273   : > { %326 = vst.msk [vmem:[%s211_s7] sm:$0x1] %vm325_vm3, %v323_v31 }
 0x274   : > { %611 = shalt.err (!%p608_p2)
}
 0x275   : > { %s612_s3 = scalar_lea.hbm %s878_s27, 16  ;;  %s616_s18 = scalar_lea.hbm %s929_s2, 32 }
 0x276   : > { %p613_p9 = scmp.ne.s32.totalorder %s878_s27, %s612_s3  ;;  %p617_p6 = scmp.lt.u32.totalorder %s878_s27, %s929_s2 }
 0x277   : > { %p618_p13 = scmp.lt.u32.totalorder %s616_s18, %s612_s3  ;;  %p620_p8 = scmp.lt.u32.totalorder %s612_s3, %s878_s27 }
 0x278   : > { %p614_p11 = pnand %p613_p9, %p942_p0 }
 0x279   : > { %p619_p5 = por %p618_p13, %p617_p6 }
 0x27a   : > { %p615_p3 = pneg %p614_p11 }
 0x27b   : > { %p621_p7 = por %p620_p8, %p619_p5 }
 0x27d   : > { %p622_p4 = pnand %p621_p7, %p615_p3 }
 0x27f   : > { %625 = shalt.err (!%p622_p4)
}
 0x280   : > { %467 = dma.vmem_to_hbm [thread:$0]  (%p942_p0), %s880_s19, 16, %s878_s27, %s328_s28  }
 0x281 PF: > { %s353_s5 = sand.u32 1, %s664_s9   ;;  %p943_p10 = scmp.ne.s32.totalorder %s935_s24, 0 }
 0x282   : > { %p944_p12 = scmp.ge.s32.totalorder %s684_s14, 2  ;;  %s354_s16 = scalar_lea.sflag [#allocation4], %s353_s5 }
 0x284   : > { %p477_p1 = pnand %p944_p12, %p943_p10 }
 0x286   : > { %659 = dma.done.wait (!%p477_p1), %s354_s16, 16  }
 0x287   : > { %661 = vsyncadd (!%p477_p1), %s354_s16, 4294967280  ;;  %s21_s14 = sadd.s32 1, %s684_s14   ;;  %s945_s9 = smov %s668_s10 }
 0x288   : > { %p18_p2 = scmp.ge.s32.totalorder %s21_s14, 4   ;;  %s946_s10 = smov %s672_s11 }
 0x289   : > { %s947_s11 = smov %s762_s23  ;;  %s948_s12 = smov %s680_s13 }
 0x28a   : > { %s949_s13 = smov %s951_s17  ;;  %20 = sbr.rel (!%p18_p2) target bundleno = 8 (0x8), region = 86 }
 0x291   :  { %358 = vsyncpa [#allocation3], 1 }
 0x292   :  { %360 = vsyncpa [#allocation3 + $0x1], 1 }
 0x293   :  { %361 = vsyncpa [#allocation6], 1 }
 0x294   :  { %363 = vsyncpa [#allocation6 + $0x1], 1 }
 0x295   :  { %364 = vsyncpa [#allocation4], 1 }
 0x296   :  { %366 = vsyncpa [#allocation4 + $0x1], 1 }

</bundles_post_ra>
